<compile_context>
chip_gen: v6e
topology: v6e:2x2x1
jax: 0.10.0
libtpu: 0.0.40
codegen_flags: <defaults>
</compile_context>

<pallas_src>
import functools

import jax
import jax.numpy as jnp
from jax.experimental import pallas as pl
from jax.experimental.pallas import tpu as pltpu

_SQRT2_INV = 0.7071067811865476
_TILE = 2048                    # max lane tile for the row-tiled kernels
_VMEM_LIMIT = 32 * 1024 * 1024  # explicit scoped-VMEM limit (safe on v5e/v6e/v7x)

PADDING = 9
MASK_INDEX = 1
LIMIT_CONDITION = 2
INDEX_VALUE = 0
DELTA_T = 0.01


def _gelu_exact(x):
    # matches torch.nn.functional.gelu (erf formulation), f32 elementwise
    return 0.5 * x * (1.0 + jax.lax.erf(x * _SQRT2_INV))


def _round_up(x, m):
    return ((x + m - 1) // m) * m


def _pick_tile(M):
    """Lane tile: multiple of 128, grid length >= 2 when M > 128 (v7x 2 TCs)."""
    if M <= 128:
        return 128
    half = _round_up((M + 1) // 2, 128)
    return min(_TILE, half)


def _pick_cout_tile(cin, cout, b, nm, budget=8 * 1024 * 1024):
    """Cout tile for the spectral multiply so double-buffered blocks fit VMEM."""
    per = 16 * nm * (cin + b)       # f32, (re,im), double-buffered, per out chan
    fixed = 16 * cin * b * nm       # x blocks (re,im), double-buffered
    t = max(1, (budget - fixed) // per)
    if t >= cout:
        return cout
    return min(cout, max(8, (int(t) // 8) * 8))


# ---------------------------------------------------------------------------
# Pallas kernels (transposed / lane-dense layout: rows = channels, lanes = M)
# ---------------------------------------------------------------------------
def _linear_t_kernel(x_ref, w_ref, b_ref, o_ref):
    # y (N, tm) = w (N, K) @ x (K, tm) + b (N, 1)
    x = x_ref[...].astype(jnp.bfloat16)
    w = w_ref[...].astype(jnp.bfloat16)
    y = jnp.dot(w, x, preferred_element_type=jnp.float32) + b_ref[...]
    o_ref[...] = y.astype(o_ref.dtype)


def _mix_t_kernel(x1_ref, h_ref, w_ref, b_ref, o_ref, *, apply_gelu):
    # fused Fourier-layer merge: out = act( x1 + W^T @ h + b ), f32 elementwise
    w = w_ref[...].astype(jnp.bfloat16)
    h = h_ref[...].astype(jnp.bfloat16)
    y = jnp.dot(w, h, preferred_element_type=jnp.float32)
    y = y + b_ref[...] + x1_ref[...].astype(jnp.float32)
    if apply_gelu:
        y = _gelu_exact(y)
    o_ref[...] = y.astype(o_ref.dtype)


def _head_t_kernel(h_ref, xin_ref, init_ref, w1_ref, b1_ref, w2_ref, b2_ref,
                   o_ref, *, temporal, delta_t):
    # fused projection head: fc1 -> gelu -> fc2 -> mask/boundary combine.
    w1 = w1_ref[...].astype(jnp.bfloat16)                 # (128, width)
    h = jnp.dot(w1, h_ref[...].astype(jnp.bfloat16),
                preferred_element_type=jnp.float32) + b1_ref[...]
    h = _gelu_exact(h)                                    # (128, tm) f32
    # fc2 (128 -> 1): VPU multiply + sublane reduction (no 1-column MXU op).
    y = jnp.sum(h * w2_ref[...], axis=0, keepdims=True) + b2_ref[...]  # (1, tm)
    init = init_ref[...]
    if temporal:
        v = init + delta_t * y
    else:
        v = y + init
    mask = xin_ref[pl.ds(MASK_INDEX, 1), :]               # (1, tm) from raw input
    bnd = xin_ref[pl.ds(LIMIT_CONDITION, 1), :]
    o_ref[...] = (v * (1.0 - mask) + bnd * mask).astype(o_ref.dtype)


def _cmul_kernel(xr_ref, xi_ref, wr_ref, wi_ref, yr_ref, yi_ref):
    # Complex per-mode channel mix on the VPU, modes on lanes.
    # xr/xi: (Cin, B, NM); wr/wi: (Cin, tco, NM); yr/yi: (B, tco, NM).
    cin = xr_ref.shape[0]
    nb = yr_ref.shape[0]
    tco, nm = yr_ref.shape[1], yr_ref.shape[2]
    xr = xr_ref[...]
    xi = xi_ref[...]
    wr = wr_ref[...]
    wi = wi_ref[...]
    for b in range(nb):                     # static, fully unrolled (B small)
        acc_r = jnp.zeros((tco, nm), jnp.float32)
        acc_i = jnp.zeros((tco, nm), jnp.float32)
        for i in range(cin):                # static, fully unrolled
            xr_ib = xr[i, b]                # (NM,) lane vector
            xi_ib = xi[i, b]
            acc_r = acc_r + wr[i] * xr_ib - wi[i] * xi_ib
            acc_i = acc_i + wi[i] * xr_ib + wr[i] * xi_ib
        yr_ref[b] = acc_r
        yi_ref[b] = acc_i


# ---------------------------------------------------------------------------
# Pallas wrappers
# ---------------------------------------------------------------------------
def linear_t_pallas(x_t, w_t, b_col, out_dtype=jnp.float32):
    """y_t (N, M) = w_t (N, K) @ x_t (K, M) + b, lane-dense row tiling."""
    K, M = x_t.shape
    N = w_t.shape[0]
    tm = _pick_tile(M)
    grid = (pl.cdiv(M, tm),)
    cost = pl.CostEstimate(
        flops=int(2 * M * K * N + M * N),
        transcendentals=0,
        bytes_accessed=int(x_t.dtype.itemsize * K * M + 4 * (N * K + N)
                           + jnp.dtype(out_dtype).itemsize * N * M),
    )
    return pl.pallas_call(
        _linear_t_kernel,
        out_shape=jax.ShapeDtypeStruct((N, M), out_dtype),
        grid=grid,
        in_specs=[
            pl.BlockSpec((K, tm), lambda i: (0, i)),
            pl.BlockSpec((N, K), lambda i: (0, 0)),
            pl.BlockSpec((N, 1), lambda i: (0, 0)),
        ],
        out_specs=pl.BlockSpec((N, tm), lambda i: (0, i)),
        compiler_params=pltpu.CompilerParams(
            dimension_semantics=("parallel",), vmem_limit_bytes=_VMEM_LIMIT),
        cost_estimate=cost,
    )(x_t, w_t, b_col)


def mix_t_pallas(x1_t, h_t, w_t, b_col, apply_gelu):
    """h' = act(x1 + W^T @ h + b) in (C, M) layout; bf16 storage, f32 math."""
    W, M = h_t.shape
    tm = _pick_tile(M)
    grid = (pl.cdiv(M, tm),)
    cost = pl.CostEstimate(
        flops=int(2 * M * W * W + 3 * M * W),
        transcendentals=int(M * W) if apply_gelu else 0,
        bytes_accessed=int(x1_t.dtype.itemsize * W * M
                           + h_t.dtype.itemsize * W * M
                           + 4 * (W * W + W) + 2 * W * M),
    )
    return pl.pallas_call(
        functools.partial(_mix_t_kernel, apply_gelu=apply_gelu),
        out_shape=jax.ShapeDtypeStruct((W, M), jnp.bfloat16),
        grid=grid,
        in_specs=[
            pl.BlockSpec((W, tm), lambda i: (0, i)),
            pl.BlockSpec((W, tm), lambda i: (0, i)),
            pl.BlockSpec((W, W), lambda i: (0, 0)),
            pl.BlockSpec((W, 1), lambda i: (0, 0)),
        ],
        out_specs=pl.BlockSpec((W, tm), lambda i: (0, i)),
        compiler_params=pltpu.CompilerParams(
            dimension_semantics=("parallel",), vmem_limit_bytes=_VMEM_LIMIT),
        cost_estimate=cost,
    )(x1_t, h_t, w_t, b_col)


def head_t_pallas(h_t, xin_t, init_row, w1t, b1, w2, b2, temporal, delta_t):
    """Fused fc1 -> gelu -> fc2 -> mask/boundary combine; output (1, M) f32."""
    W, M = h_t.shape
    Cin = xin_t.shape[0]
    H = w1t.shape[0]
    tm = _pick_tile(M)
    grid = (pl.cdiv(M, tm),)
    cost = pl.CostEstimate(
        flops=int(2 * M * W * H + 3 * M * H + 8 * M),
        transcendentals=int(M * H),
        bytes_accessed=int(h_t.dtype.itemsize * W * M
                           + 4 * (Cin * M + M + H * W + 2 * H + 1 + M)),
    )
    return pl.pallas_call(
        functools.partial(_head_t_kernel, temporal=temporal, delta_t=delta_t),
        out_shape=jax.ShapeDtypeStruct((1, M), jnp.float32),
        grid=grid,
        in_specs=[
            pl.BlockSpec((W, tm), lambda i: (0, i)),
            pl.BlockSpec((Cin, tm), lambda i: (0, i)),
            pl.BlockSpec((1, tm), lambda i: (0, i)),
            pl.BlockSpec((H, W), lambda i: (0, 0)),
            pl.BlockSpec((H, 1), lambda i: (0, 0)),
            pl.BlockSpec((H, 1), lambda i: (0, 0)),
            pl.BlockSpec((1, 1), lambda i: (0, 0)),
        ],
        out_specs=pl.BlockSpec((1, tm), lambda i: (0, i)),
        compiler_params=pltpu.CompilerParams(
            dimension_semantics=("parallel",), vmem_limit_bytes=_VMEM_LIMIT),
        cost_estimate=cost,
    )(h_t, xin_t, init_row, w1t, b1, w2, b2)


def cmul_pallas(xr, xi, wr, wi):
    """Per-mode complex channel mix.  xr/xi: (Cin,B,NM), wr/wi: (Cin,Cout,NM).

    Returns yr, yi of shape (B, Cout, NM) f32 (batch-major so the kernel stores
    full (tco, NM) slabs; the tiny transpose back to channel-major is XLA)."""
    Cin, B, NM = xr.shape
    Cout = wr.shape[1]
    tco = _pick_cout_tile(Cin, Cout, B, NM)
    grid = (pl.cdiv(Cout, tco),)
    cost = pl.CostEstimate(
        flops=int(8 * Cin * Cout * B * NM),
        transcendentals=0,
        bytes_accessed=int(4 * (2 * Cin * B * NM + 2 * Cin * Cout * NM
                                + 2 * B * Cout * NM)),
    )
    return pl.pallas_call(
        _cmul_kernel,
        out_shape=(jax.ShapeDtypeStruct((B, Cout, NM), jnp.float32),
                   jax.ShapeDtypeStruct((B, Cout, NM), jnp.float32)),
        grid=grid,
        in_specs=[
            pl.BlockSpec((Cin, B, NM), lambda j: (0, 0, 0)),
            pl.BlockSpec((Cin, B, NM), lambda j: (0, 0, 0)),
            pl.BlockSpec((Cin, tco, NM), lambda j: (0, j, 0)),
            pl.BlockSpec((Cin, tco, NM), lambda j: (0, j, 0)),
        ],
        out_specs=(pl.BlockSpec((B, tco, NM), lambda j: (0, j, 0)),
                   pl.BlockSpec((B, tco, NM), lambda j: (0, j, 0))),
        compiler_params=pltpu.CompilerParams(
            dimension_semantics=("parallel",), vmem_limit_bytes=_VMEM_LIMIT),
        cost_estimate=cost,
    )(xr, xi, wr, wi)


# ---------------------------------------------------------------------------
# Spectral conv (FFT glue in plain JAX, mode multiply in Pallas)
# ---------------------------------------------------------------------------
def spectral_conv2d(h_cbhw, wr, wi, modes1, modes2):
    """h: (C, B, Hp, Wp) -> (Cout, B, Hp, Wp) f32; FFT over the last two axes."""
    C, B, Hp, Wp = h_cbhw.shape
    Cout = wr.shape[1]
    Wf = Wp // 2 + 1
    assert Hp >= 2 * modes1 and Wf >= modes2

    x_ft = jnp.fft.rfft2(h_cbhw.astype(jnp.float32), axes=(2, 3))   # (C,B,Hp,Wf)
    xm = jnp.concatenate(
        [x_ft[:, :, :modes1, :modes2], x_ft[:, :, Hp - modes1:, :modes2]],
        axis=2).reshape(C, B, 2 * modes1 * modes2)
    xr_ = jnp.real(xm).astype(jnp.float32)
    xi_ = jnp.imag(xm).astype(jnp.float32)

    yr, yi = cmul_pallas(xr_, xi_, wr, wi)                  # (B, Cout, NM)
    y = jax.lax.complex(yr, yi)
    y = jnp.transpose(y, (1, 0, 2)).reshape(Cout, B, 2 * modes1, modes2)

    mid = jnp.zeros((Cout, B, Hp - 2 * modes1, modes2), dtype=jnp.complex64)
    out_ft = jnp.concatenate([y[:, :, :modes1], mid, y[:, :, modes1:]], axis=2)
    out_ft = jnp.pad(out_ft, ((0, 0), (0, 0), (0, 0), (0, Wf - modes2)))
    return jnp.fft.irfft2(out_ft, s=(Hp, Wp), axes=(2, 3)).astype(jnp.float32)


# ---------------------------------------------------------------------------
# Parameter preparation (spectral-weight packing hoisted out of the forward)
# ---------------------------------------------------------------------------
def prepare_params(params):
    width = params["fc0_w"].shape[1]
    m1, m2 = params["modes1"], params["modes2"]
    rp = {
        "modes1": m1, "modes2": m2, "width": width,
        "fc0_wt": params["fc0_w"].T,                       # (width, Cin)
        "fc0_b": params["fc0_b"].reshape(width, 1),
        "fc1_wt": params["fc1_w"].T,                       # (128, width)
        "fc1_b": params["fc1_b"].reshape(-1, 1),
        "fc2_w": params["fc2_w"],                          # (128, 1)
        "fc2_b": params["fc2_b"].reshape(1, 1),
        "layers": [],
    }
    for lp in params["layers"]:
        # top modes (weights1) then bottom modes (weights2), flattened row-major
        wr = jnp.concatenate([lp["sw1_r"], lp["sw2_r"]],
                             axis=2).reshape(width, width, 2 * m1 * m2)
        wi = jnp.concatenate([lp["sw1_i"], lp["sw2_i"]],
                             axis=2).reshape(width, width, 2 * m1 * m2)
        rp["layers"].append({
            "wr": wr, "wi": wi,
            "w_wt": lp["w_w"].T,                           # (Cout, Cin)
            "w_b": lp["w_b"].reshape(width, 1),
        })
    return rp


# ---------------------------------------------------------------------------
# FNO2d forward
# ---------------------------------------------------------------------------
def fno2d_forward(x, rp, init_solution, temporal=False):
    """x: (B, S, S, input_dim) f32 (channels-last) -> (B, S, S, 1) f32."""
    B, S, _, Cin = x.shape
    width = rp["width"]
    m1, m2 = rp["modes1"], rp["modes2"]

    # channels-first flattened view: (Cin, B*S*S), spatial rows on lanes
    x_t = jnp.transpose(x, (3, 0, 1, 2)).reshape(Cin, -1)

    # fc0 lift (bf16 activation storage, f32 accumulation in-kernel)
    h = linear_t_pallas(x_t, rp["fc0_wt"], rp["fc0_b"], out_dtype=jnp.bfloat16)
    h = h.reshape(width, B, S, S)
    # F.pad([0, pad, 0, pad]) on NCHW == pad bottom of H and right of W
    h = jnp.pad(h, ((0, 0), (0, 0), (0, PADDING), (0, PADDING)))
    Hp = S + PADDING
    Mp = B * Hp * Hp

    for li, lp in enumerate(rp["layers"]):
        x1 = spectral_conv2d(h, lp["wr"], lp["wi"], m1, m2)   # f32
        h = mix_t_pallas(
            x1.astype(jnp.bfloat16).reshape(width, Mp),
            h.reshape(width, Mp),
            lp["w_wt"], lp["w_b"],
            apply_gelu=(li < 3),
        ).reshape(width, B, Hp, Hp)

    # crop padding, project back (fc1 + gelu + fc2 + combine fused)
    h = h[:, :, :S, :S].reshape(width, B * S * S)

    if temporal:
        init_row = x_t[INDEX_VALUE:INDEX_VALUE + 1, :]
    else:
        init_row = jnp.broadcast_to(
            init_solution[None, :, :], (B, S, S)).reshape(1, -1)
    init_row = init_row.astype(jnp.float32)

    out = head_t_pallas(h, x_t, init_row,
                        rp["fc1_wt"], rp["fc1_b"], rp["fc2_w"], rp["fc2_b"],
                        temporal, DELTA_T)                 # (1, B*S*S)
    return out.reshape(B, S, S, 1)


# ---------------------------------------------------------------------------
# Deterministic parameter init (synthetic — shapes match the nn.Module)
# ---------------------------------------------------------------------------
def init_params(key, input_dim, width, modes1, modes2, s):
    keys = jax.random.split(key, 32)
    k = iter(keys)
    u = lambda kk, shape, lo=-0.1, hi=0.1: jax.random.uniform(
        kk, shape, dtype=jnp.float32, minval=lo, maxval=hi)
    scale = 1.0 / (width * width)

    params = {
        "modes1": modes1,
        "modes2": modes2,
        "fc0_w": u(next(k), (input_dim, width)),
        "fc0_b": u(next(k), (width,)),
        "fc1_w": u(next(k), (width, 128)),
        "fc1_b": u(next(k), (128,)),
        "fc2_w": u(next(k), (128, 1)),
        "fc2_b": u(next(k), (1,)),
        "layers": [],
    }
    for _ in range(4):
        params["layers"].append({
            # SpectralConv2d weights: scale * rand(cfloat) -> U[0,scale) re/im
            "sw1_r": u(next(k), (width, width, modes1, modes2), 0.0, scale),
            "sw1_i": u(next(k), (width, width, modes1, modes2), 0.0, scale),
            "sw2_r": u(next(k), (width, width, modes1, modes2), 0.0, scale),
            "sw2_i": u(next(k), (width, width, modes1, modes2), 0.0, scale),
            # Conv2d(width, width, 1) == channel matmul, stored as (Cin, Cout)
            "w_w": u(next(k), (width, width)),
            "w_b": u(next(k), (width,)),
        })
    init_solution = u(jax.random.PRNGKey(123), (s, s))  # synthetic path_init
    return params, init_solution


if __name__ == "__main__":
    B, S, INPUT_DIM = 2, 16, 3
    MODES1 = MODES2 = 6
    WIDTH = 16

    key = jax.random.PRNGKey(0)
    kp, kx = jax.random.split(key)
    params, init_solution = init_params(kp, INPUT_DIM, WIDTH, MODES1, MODES2, S)
    rp = prepare_params(params)   # weight packing hoisted out of the forward
    x = jax.random.uniform(kx, (B, S, S, INPUT_DIM), dtype=jnp.float32)

    out = jax.block_until_ready(
        fno2d_forward(x, rp, init_solution, temporal=False))
    assert out.shape == (B, S, S, 1) and out.dtype == jnp.float32
    assert bool(jnp.all(jnp.isfinite(out)))

    # also exercise the temporal branch
    out_t = jax.block_until_ready(
        fno2d_forward(x, rp, init_solution, temporal=True))
    assert out_t.shape == (B, S, S, 1)
    assert bool(jnp.all(jnp.isfinite(out_t)))

    print("KERNEL_OK")
</pallas_src>

<mosaic_0001>
module attributes {stable_mosaic.version = 11 : i64} {
  func.func @_linear_t_kernel(%arg0: i32, %arg1: memref<3x256xf32, #tpu.memory_space<vmem>>, %arg2: memref<16x3xf32, #tpu.memory_space<vmem>>, %arg3: memref<16x1xf32, #tpu.memory_space<vmem>>, %arg4: memref<16x256xbf16, #tpu.memory_space<vmem>>) attributes {dimension_semantics = [#tpu.dimension_semantics<parallel>], iteration_bounds = array<i64: 2>, scalar_prefetch = 0 : i64, scratch_operands = 0 : i64, tpu.core_type = #tpu.core_type<tc>, window_params = [{transform_indices = @transform_0, window_bounds = array<i64: 3, 256>}, {pipeline_mode = #tpu.pipeline_mode<synchronous>, transform_indices = @transform_1, window_bounds = array<i64: 16, 3>}, {pipeline_mode = #tpu.pipeline_mode<synchronous>, transform_indices = @transform_2, window_bounds = array<i64: 16, 1>}, {transform_indices = @transform_3, window_bounds = array<i64: 16, 256>}]} {
    %c0 = arith.constant 0 : index
    %c0_0 = arith.constant 0 : index
    %0 = vector.load %arg1[%c0, %c0_0] : memref<3x256xf32, #tpu.memory_space<vmem>>, vector<3x256xf32>
    %1 = arith.truncf %0 : vector<3x256xf32> to vector<3x256xbf16>
    %c0_1 = arith.constant 0 : index
    %c0_2 = arith.constant 0 : index
    %2 = vector.load %arg2[%c0_1, %c0_2] : memref<16x3xf32, #tpu.memory_space<vmem>>, vector<16x3xf32>
    %3 = arith.truncf %2 : vector<16x3xf32> to vector<16x3xbf16>
    %cst = arith.constant dense<0.000000e+00> : vector<16x256xf32>
    %4 = tpu.matmul %3, %1, %cst {dimension_numbers = #tpu.dot_dimension_numbers<[1], [0], [0], [1], [0, 0, 1, 1], [], []>} : vector<16x3xbf16>, vector<3x256xbf16>, vector<16x256xf32> -> vector<16x256xf32>
    %c0_3 = arith.constant 0 : index
    %c0_4 = arith.constant 0 : index
    %5 = vector.load %arg3[%c0_3, %c0_4] : memref<16x1xf32, #tpu.memory_space<vmem>>, vector<16x1xf32>
    %6 = vector.broadcast %5 : vector<16x1xf32> to vector<16x256xf32>
    %7 = arith.addf %4, %6 : vector<16x256xf32>
    %8 = arith.truncf %7 : vector<16x256xf32> to vector<16x256xbf16>
    %c0_5 = arith.constant 0 : index
    %c0_6 = arith.constant 0 : index
    %9 = vector.load %arg4[%c0_5, %c0_6] : memref<16x256xbf16, #tpu.memory_space<vmem>>, vector<16x256xbf16>
    tpu.vector_store %arg4[%c0_5, %c0_6], %8 {strides = array<i32>} : memref<16x256xbf16, #tpu.memory_space<vmem>>, vector<16x256xbf16>,
    return
  }
  func.func @transform_0(%arg0: i32) -> (i32, i32) {
    %c0_i32 = arith.constant 0 : i32
    %c0_i32_0 = arith.constant 0 : i32
    return %c0_i32, %arg0 : i32, i32
  }
  func.func @transform_1(%arg0: i32) -> (i32, i32) {
    %c0_i32 = arith.constant 0 : i32
    %c0_i32_0 = arith.constant 0 : i32
    %c0_i32_1 = arith.constant 0 : i32
    return %c0_i32, %c0_i32_0 : i32, i32
  }
  func.func @transform_2(%arg0: i32) -> (i32, i32) {
    %c0_i32 = arith.constant 0 : i32
    %c0_i32_0 = arith.constant 0 : i32
    %c0_i32_1 = arith.constant 0 : i32
    return %c0_i32, %c0_i32_0 : i32, i32
  }
  func.func @transform_3(%arg0: i32) -> (i32, i32) {
    %c0_i32 = arith.constant 0 : i32
    %c0_i32_0 = arith.constant 0 : i32
    return %c0_i32, %arg0 : i32, i32
  }
}

</mosaic_0001>

<bundles_post_ra>
// kernel: tpu_custom_call.1
= control target key start
LH: loop header
LB: loop body
LE: loop exit
PB: predicated region body
PF: predicated region fallthrough
CT: control target
= control target key end

     0   :  { %8 = vsyncpa [#allocation3], 0  ;;  %s606_s0 = inlined_call_operand.vmem [shape: f32[3,512], index: 0, kind: input, shape index: {}]   ;;  %s607_s1 = inlined_call_operand.vmem [shape: f32[16,3], index: 1, kind: input, shape index: {}]   ;;  %s608_s2 = inlined_call_operand.vmem [shape: f32[16,1], index: 2, kind: input, shape index: {}]   ;;  %s609_s3 = inlined_call_operand.hbm [shape: bf16[16,512], index: 3, kind: output, shape index: {}]  }
   0x1   :  { %10 = vsyncpa [#allocation3 + $0x1], 0  ;;  %s493_s12 = smov 0   ;;  %s495_s13 = smov 0  }
   0x2   :  { %s497_s14 = smov 0   ;;  %s499_s15 = smov 0  }
   0x3 LB: > { %s514_s16 = sadd.s32 4294967295, %s465_s15   ;;  %s341_s17 = sadd.s32 4294967294, %s465_s15   ;;  %s465_s15 = sphi %s499_s15, %s615_s15   ;;  %s461_s14 = sphi %s497_s14, %s614_s14   ;;  %s457_s13 = sphi %s495_s13, %s613_s13   ;;  %s453_s12 = sphi %s493_s12, %s612_s12  }
   0x4   : > { %s518_s18 = sadd.s32 1, %s465_s15   ;;  %s91_s19 = sadd.s32 1, %s461_s14 }
   0x5   : > { %s88_s20 = ssub.s32 %s465_s15, %s518_s18  ;;  %p101_p0 = scmp.ne.s32.totalorder %s461_s14, %s457_s13 }
   0x6   : > { %p89_p1 = scmp.eq.s32.totalorder %s88_s20, 0  ;;  %p102_p2 = scmp.eq.s32.totalorder %s514_s16, 1 }
   0x7   : > { %p107_p3 = scmp.ne.s32.totalorder %s457_s13, %s453_s12  ;;  %p108_p4 = scmp.eq.s32.totalorder %s341_s17, 1 }
   0x8   : > { %s529_s21 = scalar_select %p89_p1, %s461_s14, %s91_s19  }
   0x9   : > { %p531_p5 = por %p102_p2, %p101_p0  ;;  %p535_p6 = por %p108_p4, %p107_p3 }
   0xa   : > { %p344_p7 = scmp.ge.s32.totalorder %s465_s15, 1  ;;  %p141_p8 = scmp.lt.s32.totalorder %s465_s15, 3 }
   0xc   : > { %p142_p9 = pnand %p344_p7, %p141_p8 }
   0xd   : > { %s346_s24 = sshll.u32 (!%p142_p9), %s514_s16, 1  ;;  %s162_s10 = sand.u32 (!%p142_p9), 1, %s457_s13  }
   0xe   : > { %145 = sbr.rel (%p142_p9) target bundleno = 251 (0xfb), region = 32  ;;  %p166_p10 = scmp.lt.s32.totalorder (!%p142_p9), %s346_s24, 3 }
   0xf   : > { %s345_s11 = sshll.u32 (!%p142_p9), %s162_s10, 4  ;;  %s358_s20 = sshll.u32 (!%p142_p9), %s514_s16, 7 }
  0x10   : > { %s164_s17 = scalar_lea.vmem (!%p142_p9), [#allocation2], %s345_s11  ;;  %s564_s26 = scalar_lea.hbm (!%p142_p9), %s609_s3, %s358_s20 }
  0x11   : > { %s279_s19 = sshll.u32 (!%p142_p9), %s164_s17, 4  ;;  %s566_s27 = scalar_lea.sflag (!%p142_p9), [#allocation3], %s162_s10  ;;  %s559_s19 = int_to_ptr.vmem [resolvable:$true] %s279_s19 }
  0x12   : > { %s405_s16 = scalar_lea.vmem (!%p142_p9), %s559_s19, 256  ;;  %s469_s28 = smov (!%p142_p9), [#allocation2]  }
  0x13   : > { %v467_v0 = vmov 0   ;;  %v182_v1 = vld [vmem:[%s608_s2] sm:$0xff]  ;;  %vm198_vm0 = vcmask 1040384   ;;  %s617_s24 = smov (!%p166_p10, %s346_s24), 3  ;;  %v183_v2 = vld [vmem:[%s608_s2 + $0x8] sm:$0xff]  ;;  %vm199_vm1 = vcmask 1041408   ;;  %p406_p11 = scmp.ne.s32.totalorder %s559_s19, %s405_s16 }
  0x14   : > { %240 = vmatprep.mubr.bf16.mxu0 %v467_v0  ;;  %403 = vset.pattern.permute.xlu0 %v467_v0  ;;  %s347_s29 = sshll.u32 %s617_s24, 2  ;;  %v468_v3 = vmov 65535   ;;  %v179_v11 = vld [vmem:[%s607_s1] sm:$0xff]  ;;  %v180_v12 = vld [vmem:[%s607_s1 + $0x8] sm:$0xff]  ;;  %vm194_vm2 = vcmask 23552  }
  0x15   : > { %186 = vperm.xlu0 %403, %v182_v1   ;;  %v200_v4 = vsel %vm198_vm0, 4294967295, %v468_v3  ;;  %s169_s5 = scalar_lea.vmem %s606_s0, %s347_s29  ;;  %v181_v14 = vpack.c.bf16 %v180_v12, %v179_v11  ;;  %p407_p12 = pnand %p406_p11, %p531_p5 }
  0x16   : > { %v173_v5 = vld [vmem:[%s169_s5] sm:$0x77]  ;;  %v201_v7 = vsel %vm199_vm1, %v200_v4, 0  ;;  %s409_s29 = sshll.u32 %s469_s28, 4  ;;  %s410_s29 = int_to_ptr.vmem [resolvable:$false] %s409_s29 }
  0x17   : > { %v175_v6 = vcombine.high %v173_v5, %v173_v5  ;;  %v177_v8 = vpack.c.bf16 %v173_v5, %v173_v5  ;;  %p408_p13 = pneg %p407_p12  ;;  %s411_s30 = scalar_lea.vmem %s410_s29, 512 }
  0x18   : > { %p412_p0 = scmp.lt.s32.totalorder %s559_s19, %s410_s29  ;;  %p413_p1 = scmp.lt.s32.totalorder %s411_s30, %s405_s16 }
  0x19   : > { %191 = vperm.xlu0 %403, %v183_v2   ;;  %v178_v9 = vpack.c.bf16 %v175_v6, %v175_v6  ;;  %v203_v10 = vand.u32 %v201_v7, %v177_v8 }
  0x1a   : > { %p414_p2 = por %p413_p1, %p412_p0 }
  0x1b   : > { %v206_v13 = vand.u32 %v201_v7, %v178_v9 }
  0x1c   : > { %p415_p3 = pnand %p414_p2, %p408_p13 }
  0x1d   : > { %222 = vmatprep.subr.bf16.mxu0 %v206_v13 }
  0x1e   : > { %223 = vmatpush1.bf16.msra.mxu0 %v203_v10 }
  0x21   : > { %348 = vmatmul.mubr.msk.bf16.vlgmr.msra.gmra.mxu0 %vm194_vm2, %v181_v14 }
  0x90   : > { %v187_v15 = vpop.permute.xlu0 %186 }
  0x94   : > { %v192_v22 = vpop.permute.xlu0 %191 }
  0xe1   : > { %v242_v16 = vpop.f32.mrf.mxu0 }
  0xe2   : > { %v243_v18 = vadd.f32 %v242_v16, %v187_v15 }
  0xe3   : > { %v244_v17 = vpop.f32.mrf.mxu0 }
  0xe4   : > { %v245_v19 = vadd.f32 %v244_v17, %v187_v15 }
  0xe5   : > { %v246_v20 = vpop.f32.mrf.mxu0 }
  0xe6   : > { %v356_v21 = vpack.c.bf16 %v245_v19, %v243_v18  ;;  %v247_v24 = vadd.f32 %v246_v20, %v192_v22 }
  0xe7   : > { %v248_v23 = vpop.f32.mrf.mxu0 }
  0xe8   : > { %263 = vst [vmem:[%s164_s17] sm:$0xff] %v356_v21  ;;  %v249_v25 = vadd.f32 %v248_v23, %v192_v22 }
  0xea   : > { %v357_v26 = vpack.c.bf16 %v249_v25, %v247_v24 }
  0xec   : > { %264 = vst [vmem:[%s164_s17 + $0x8] sm:$0xff] %v357_v26 }
  0xed   : > { %418 = shalt.err (!%p415_p3)
}
  0xee   : > { %s419_s4 = scalar_lea.hbm %s564_s26, 256  ;;  %s423_s7 = scalar_lea.hbm %s609_s3, 512 }
  0xef   : > { %p420_p4 = scmp.ne.s32.totalorder %s564_s26, %s419_s4  ;;  %p424_p9 = scmp.lt.s32.totalorder %s564_s26, %s609_s3 }
  0xf0   : > { %p425_p10 = scmp.lt.s32.totalorder %s423_s7, %s419_s4 }
  0xf1   : > { %p421_p7 = pnand %p420_p4, %p531_p5 }
  0xf2   : > { %p426_p11 = por %p425_p10, %p424_p9 }
  0xf3   : > { %p422_p8 = pneg %p421_p7 }
  0xf5   : > { %p427_p12 = pnand %p426_p11, %p422_p8 }
  0xf7   : > { %430 = shalt.err (!%p427_p12)
}
  0xf8   : > { %s470_s10 = smov 128   ;;  %s471_s11 = smov 256  }
  0xf9   : > { %s472_s17 = smov 8  }
  0xfa   : > { %359 = dma.vmem_to_hbm [thread:$0]  (%p531_p5), %s559_s19, 256, %s564_s26, %s566_s27, %s470_s10, %s471_s11, %s472_s17  }
  0xfb PF: > { %p365_p13 = scmp.ge.s32.totalorder %s465_s15, 2  ;;  %s294_s20 = sand.u32 1, %s453_s12  }
  0xfc   : > { %s295_s24 = scalar_lea.sflag [#allocation3], %s294_s20 }
  0xfd   : > { %p362_p0 = pnand %p365_p13, %p535_p6 }
  0xff   : > { %p363_p1 = pneg %p362_p0 }
 0x101   : > { %448 = dma.done.wait (%p363_p1), %s295_s24, 256  }
 0x102   : > { %450 = vsyncadd (%p363_p1), %s295_s24, 4294967040  ;;  %p13_p2 = scmp.ge.s32.totalorder %s518_s18, 4   ;;  %s612_s12 = smov %s457_s13 }
 0x103   : > { %s613_s13 = smov %s461_s14  ;;  %s614_s14 = smov %s529_s21 }
 0x104   : > { %s615_s15 = smov %s518_s18  ;;  %15 = sbr.rel (!%p13_p2) target bundleno = 3 (0x3), region = 67 }
 0x109   :  { %300 = vsyncpa [#allocation3], 1 }
 0x10a   :  { %302 = vsyncpa [#allocation3 + $0x1], 1 }

</bundles_post_ra>
